<compile_context>
chip_gen: v6e
topology: v6e:2x2x1
jax: 0.10.0
libtpu: 0.0.40
codegen_flags: <defaults>
</compile_context>

<pallas_src>
import functools

import jax
import jax.numpy as jnp
from jax import lax
from jax.experimental import pallas as pl
from jax.experimental.pallas import tpu as pltpu

STATE_DIM = 2      # Lotka-Volterra state (prey, predator)
CONTEXT_DIM = 4    # CAVIA context parameters
HIDDEN = 32
BATCH = 16         # example batch (kept small; kernel scales to hundreds of rows)
BLOCK_B = 8        # batch-chunk per grid step (parallel axis -> 2 TCs on v7x)

# ---- Packed parameter slab layout (rows x HIDDEN lanes), all offsets static ----
_R_W1X = 0                       # rows [0, 2)   : W1_x                     (2, H)
_R_B1  = 2                       # row  2        : b1_eff = ctx@W1_c + b1   (1, H)
_R_B2  = 3                       # row  3        : b2                       (1, H)
_R_W3T = 4                       # rows [4, 6)   : W3^T                     (2, H)
_R_B3  = 6                       # row  6        : b3 (padded to H lanes)
_R_PAD = 7                       # row  7        : zero padding (8-row alignment)
_R_W2  = 8                       # rows [8, 40)  : W2                       (H, H)
_ROWS  = _R_W2 + HIDDEN          # 40 rows total


def _unpack(p, scale=1.0):
    """Slice the packed slab ONCE (loop-invariant; hoisted out of solver loops).
    `scale` exactly folds the Euler dt into the output layer (dt is static)."""
    w1x0 = p[_R_W1X:_R_W1X + 1, :]                   # (1, H)
    w1x1 = p[_R_W1X + 1:_R_W1X + 2, :]               # (1, H)
    b1 = p[_R_B1:_R_B1 + 1, :]                       # (1, H), context folded in
    b2 = p[_R_B2:_R_B2 + 1, :]                       # (1, H)
    w2 = p[_R_W2:_R_W2 + HIDDEN, :]                  # (H, H)
    w3t0 = scale * p[_R_W3T:_R_W3T + 1, :]           # (1, H)
    w3t1 = scale * p[_R_W3T + 1:_R_W3T + 2, :]       # (1, H)
    b3_0 = scale * p[_R_B3:_R_B3 + 1, 0:1]           # (1, 1)
    b3_1 = scale * p[_R_B3:_R_B3 + 1, 1:2]           # (1, 1)
    return (w1x0, w1x1, b1, b2, w2, w3t0, w3t1, b3_0, b3_1)


def _field(x0, x1, prm):
    """Vector field on split state columns x0, x1 : (B, 1). Returns (d0, d1)."""
    w1x0, w1x1, b1, b2, w2, w3t0, w3t1, b3_0, b3_1 = prm
    # Layer 1 on the VPU (contraction dim is only 2; skip the MXU).
    h = jnp.tanh(b1 + x0 * w1x0 + x1 * w1x1)                              # (B, H)
    # Layer 2: the only real matmul (HxH) -> MXU, f32 accumulation.
    h = jnp.tanh(jnp.dot(h, w2, preferred_element_type=jnp.float32) + b2)
    # Layer 3 on VPU/XLU (output dim is only 2; two lane reductions).
    d0 = jnp.sum(h * w3t0, axis=-1, keepdims=True) + b3_0                 # (B, 1)
    d1 = jnp.sum(h * w3t1, axis=-1, keepdims=True) + b3_1                 # (B, 1)
    return d0, d1
    # TODO(synk): v6e A/B — replace the two lane reductions with one MXU pass
    # against a zero-padded (H, 128) W3 block (MXU is idle after layer 2).


def _pack_cols(c0, c1):
    """Assemble two (B,1) columns into (B, STATE_DIM) — done ONCE per kernel."""
    col = lax.broadcasted_iota(jnp.int32, (c0.shape[0], STATE_DIM), 1)
    return jnp.where(col == 0, c0, c1)


def _odefunc_kernel(x_ref, p_ref, out_ref):
    prm = _unpack(p_ref[...].astype(jnp.float32))
    x = x_ref[...].astype(jnp.float32)
    d0, d1 = _field(x[:, 0:1], x[:, 1:2], prm)
    out_ref[...] = _pack_cols(d0, d1).astype(out_ref.dtype)


def _euler_kernel(x_ref, p_ref, out_ref, *, num_steps, dt):
    # Weights (with dt folded into layer 3) and split state columns stay
    # resident in VMEM/vregs across all solver steps.
    prm = _unpack(p_ref[...].astype(jnp.float32), scale=dt)
    x = x_ref[...].astype(jnp.float32)

    def body(_, carry):
        c0, c1 = carry
        d0, d1 = _field(c0, c1, prm)
        return (c0 + d0, c1 + d1)            # dt already folded into w3t/b3

    x0, x1 = lax.fori_loop(0, num_steps, body, (x[:, 0:1], x[:, 1:2]),
                           unroll=max(1, min(8, num_steps)))
    out_ref[...] = _pack_cols(x0, x1).astype(out_ref.dtype)


def pack_params(context, params):
    """Fold the fixed-per-module context into an effective layer-1 bias and pack
    everything into one contiguous VMEM slab (single DMA, static slices).
    NOTE: must be re-run whenever `context` changes (per task / adaptation step)."""
    w1x, w1c, b1, w2, b2, w3, b3 = params
    b1_eff = context.reshape(1, -1).astype(jnp.float32) @ w1c + b1       # (1, H)
    b3_pad = jnp.zeros((1, HIDDEN), jnp.float32).at[:, :STATE_DIM].set(b3)
    pad_row = jnp.zeros((1, HIDDEN), jnp.float32)
    slab = jnp.concatenate(
        [w1x, b1_eff, b2, w3.T, b3_pad, pad_row, w2], axis=0).astype(jnp.float32)
    assert slab.shape == (_ROWS, HIDDEN)
    return slab


_VMEM = pl.BlockSpec(memory_space=pltpu.MemorySpace.VMEM)


@jax.jit
def ode_func_with_context(t, x, packed_params):
    """Pallas forward pass of ODEFuncWithContext.forward(t, x). `t` unused.
    Kept for module parity only — at (B, 2) this call is ~all launch/DMA
    overhead; use `ode_integrate_euler` (or fuse your solver the same way)."""
    del t  # autonomous vector field; kept for ODE-solver signature parity
    B = x.shape[0]
    return pl.pallas_call(
        _odefunc_kernel,
        out_shape=jax.ShapeDtypeStruct((B, STATE_DIM), jnp.float32),
        in_specs=[_VMEM, _VMEM],
        out_specs=_VMEM,
    )(x, packed_params)


@functools.partial(jax.jit, static_argnames=("num_steps", "dt", "block_b"))
def ode_integrate_euler(x0, packed_params, *, num_steps, dt, block_b=None):
    """Fused explicit-Euler solve: num_steps vector-field evals in ONE kernel.
    Batch is chunked along a "parallel" grid axis (uses both TCs on v7x).
    NOTE: dt is a static python float (recompile per distinct dt; no tracers)."""
    B = x0.shape[0]
    if block_b is None or block_b >= B:
        block_b = B
    assert B % block_b == 0 and (block_b % 8 == 0 or block_b == B), (B, block_b)
    grid = (B // block_b,)
    return pl.pallas_call(
        functools.partial(_euler_kernel, num_steps=num_steps, dt=dt),
        out_shape=jax.ShapeDtypeStruct((B, STATE_DIM), jnp.float32),
        grid_spec=pltpu.PrefetchScalarGridSpec(
            num_scalar_prefetch=0,
            grid=grid,
            in_specs=[pl.BlockSpec((block_b, STATE_DIM), lambda i: (i, 0)),
                      pl.BlockSpec((_ROWS, HIDDEN), lambda i: (0, 0))],
            out_specs=pl.BlockSpec((block_b, STATE_DIM), lambda i: (i, 0)),
        ),
        input_output_aliases={0: 0},
        compiler_params=pltpu.CompilerParams(
            dimension_semantics=("parallel",)),
    )(x0, packed_params)


# ----------------------------- references (pure JAX) -----------------------------
def _reference(t, x, context, params):
    """Matches the PyTorch semantics: concat([x, ctx]) -> MLP."""
    del t
    w1x, w1c, b1, w2, b2, w3, b3 = params
    ctx = jnp.broadcast_to(context.reshape(1, -1), (x.shape[0], context.shape[-1]))
    inp = jnp.concatenate([x, ctx], axis=-1)
    w1 = jnp.concatenate([w1x, w1c], axis=0)
    h = jnp.tanh(inp @ w1 + b1)
    h = jnp.tanh(h @ w2 + b2)
    return h @ w3 + b3


def _euler_reference(x0, context, params, num_steps, dt):
    x = x0
    for _ in range(num_steps):
        x = x + dt * _reference(None, x, context, params)
    return x


def _init_params(key):
    ks = jax.random.split(key, 6)
    scale = 0.1
    w1x = scale * jax.random.normal(ks[0], (STATE_DIM, HIDDEN), jnp.float32)
    w1c = scale * jax.random.normal(ks[1], (CONTEXT_DIM, HIDDEN), jnp.float32)
    b1 = jnp.zeros((1, HIDDEN), jnp.float32)
    w2 = scale * jax.random.normal(ks[2], (HIDDEN, HIDDEN), jnp.float32)
    b2 = jnp.zeros((1, HIDDEN), jnp.float32)
    w3 = scale * jax.random.normal(ks[3], (HIDDEN, STATE_DIM), jnp.float32)
    b3 = jnp.zeros((1, STATE_DIM), jnp.float32)
    return (w1x, w1c, b1, w2, b2, w3, b3)


if __name__ == "__main__":
    key = jax.random.PRNGKey(0)
    k_x, k_ctx, k_p = jax.random.split(key, 3)

    x = jax.random.normal(k_x, (BATCH, STATE_DIM), jnp.float32)
    context = jax.random.normal(k_ctx, (CONTEXT_DIM,), jnp.float32)
    params = _init_params(k_p)
    t = jnp.float32(0.0)  # unused by the autonomous odefunc

    # Done once per ODEFuncWithContext instance (context fixed at __init__).
    packed = pack_params(context, params)

    # Single vector-field evaluation (the module's forward pass).
    out = ode_func_with_context(t, x, packed)
    jax.block_until_ready(out)
    ref = _reference(t, x, context, params)
    assert out.shape == (BATCH, STATE_DIM)
    assert jnp.allclose(out, ref, atol=1e-5, rtol=1e-5), "Pallas forward mismatch"

    # Fused Euler trajectory: many evals, one kernel launch, weights stay in VMEM,
    # batch chunks spread across a parallel grid axis.
    NUM_STEPS, DT = 16, 0.05
    xT = ode_integrate_euler(x, packed, num_steps=NUM_STEPS, dt=DT, block_b=BLOCK_B)
    jax.block_until_ready(xT)
    xT_ref = _euler_reference(x, context, params, NUM_STEPS, DT)
    assert xT.shape == (BATCH, STATE_DIM)
    assert jnp.allclose(xT, xT_ref, atol=1e-4, rtol=1e-4), "fused Euler mismatch"

    print("KERNEL_OK")
</pallas_src>

<mosaic_0001>
module attributes {stable_mosaic.version = 11 : i64} {
  func.func @_odefunc_kernel(%arg0: memref<16x2xf32, #tpu.memory_space<vmem>>, %arg1: memref<40x32xf32, #tpu.memory_space<vmem>>, %arg2: memref<16x2xf32, #tpu.memory_space<vmem>>) attributes {dimension_semantics = [], scalar_prefetch = 0 : i64, scratch_operands = 0 : i64, tpu.core_type = #tpu.core_type<tc>} {
    %c0 = arith.constant 0 : index
    %c0_0 = arith.constant 0 : index
    %0 = vector.load %arg1[%c0, %c0_0] : memref<40x32xf32, #tpu.memory_space<vmem>>, vector<40x32xf32>
    %1 = vector.extract_strided_slice %0 {offsets = [0, 0], sizes = [1, 32], strides = [1, 1]} : vector<40x32xf32> to vector<1x32xf32>
    %2 = vector.extract_strided_slice %0 {offsets = [1, 0], sizes = [1, 32], strides = [1, 1]} : vector<40x32xf32> to vector<1x32xf32>
    %3 = vector.extract_strided_slice %0 {offsets = [2, 0], sizes = [1, 32], strides = [1, 1]} : vector<40x32xf32> to vector<1x32xf32>
    %4 = vector.extract_strided_slice %0 {offsets = [3, 0], sizes = [1, 32], strides = [1, 1]} : vector<40x32xf32> to vector<1x32xf32>
    %5 = vector.extract_strided_slice %0 {offsets = [8, 0], sizes = [32, 32], strides = [1, 1]} : vector<40x32xf32> to vector<32x32xf32>
    %6 = vector.extract_strided_slice %0 {offsets = [4, 0], sizes = [1, 32], strides = [1, 1]} : vector<40x32xf32> to vector<1x32xf32>
    %cst = arith.constant 1.000000e+00 : f32
    %7 = vector.broadcast %cst : f32 to vector<1x32xf32>
    %8 = arith.mulf %7, %6 : vector<1x32xf32>
    %9 = vector.extract_strided_slice %0 {offsets = [5, 0], sizes = [1, 32], strides = [1, 1]} : vector<40x32xf32> to vector<1x32xf32>
    %cst_1 = arith.constant 1.000000e+00 : f32
    %10 = vector.broadcast %cst_1 : f32 to vector<1x32xf32>
    %11 = arith.mulf %10, %9 : vector<1x32xf32>
    %12 = vector.extract_strided_slice %0 {offsets = [6, 0], sizes = [1, 1], strides = [1, 1]} : vector<40x32xf32> to vector<1x1xf32>
    %cst_2 = arith.constant 1.000000e+00 : f32
    %13 = vector.broadcast %cst_2 : f32 to vector<1x1xf32>
    %14 = arith.mulf %13, %12 : vector<1x1xf32>
    %15 = vector.extract_strided_slice %0 {offsets = [6, 1], sizes = [1, 1], strides = [1, 1]} : vector<40x32xf32> to vector<1x1xf32>
    %cst_3 = arith.constant 1.000000e+00 : f32
    %16 = vector.broadcast %cst_3 : f32 to vector<1x1xf32>
    %17 = arith.mulf %16, %15 : vector<1x1xf32>
    %c0_4 = arith.constant 0 : index
    %c0_5 = arith.constant 0 : index
    %18 = vector.load %arg0[%c0_4, %c0_5] : memref<16x2xf32, #tpu.memory_space<vmem>>, vector<16x2xf32>
    %19 = vector.extract_strided_slice %18 {offsets = [0, 0], sizes = [16, 1], strides = [1, 1]} : vector<16x2xf32> to vector<16x1xf32>
    %20 = vector.extract_strided_slice %18 {offsets = [0, 1], sizes = [16, 1], strides = [1, 1]} : vector<16x2xf32> to vector<16x1xf32>
    %21 = vector.broadcast %19 : vector<16x1xf32> to vector<16x32xf32>
    %22 = vector.broadcast %1 : vector<1x32xf32> to vector<16x32xf32>
    %23 = arith.mulf %21, %22 : vector<16x32xf32>
    %24 = vector.broadcast %3 : vector<1x32xf32> to vector<16x32xf32>
    %25 = arith.addf %24, %23 : vector<16x32xf32>
    %26 = vector.broadcast %20 : vector<16x1xf32> to vector<16x32xf32>
    %27 = vector.broadcast %2 : vector<1x32xf32> to vector<16x32xf32>
    %28 = arith.mulf %26, %27 : vector<16x32xf32>
    %29 = arith.addf %25, %28 : vector<16x32xf32>
    %30 = math.tanh %29 : vector<16x32xf32>
    %cst_6 = arith.constant dense<0.000000e+00> : vector<16x32xf32>
    %31 = tpu.matmul %30, %5, %cst_6 {dimension_numbers = #tpu.dot_dimension_numbers<[1], [0], [0], [1], [0, 0, 1, 1], [], []>} : vector<16x32xf32>, vector<32x32xf32>, vector<16x32xf32> -> vector<16x32xf32>
    %32 = vector.broadcast %4 : vector<1x32xf32> to vector<16x32xf32>
    %33 = arith.addf %31, %32 : vector<16x32xf32>
    %34 = math.tanh %33 : vector<16x32xf32>
    %35 = vector.broadcast %8 : vector<1x32xf32> to vector<16x32xf32>
    %36 = arith.mulf %34, %35 : vector<16x32xf32>
    %cst_7 = arith.constant dense<0.000000e+00> : vector<16xf32>
    %37 = vector.multi_reduction <add>, %36, %cst_7 [1] : vector<16x32xf32> to vector<16xf32>
    %38 = vector.shape_cast %37 : vector<16xf32> to vector<16x1xf32>
    %39 = vector.broadcast %14 : vector<1x1xf32> to vector<16x1xf32>
    %40 = arith.addf %38, %39 : vector<16x1xf32>
    %41 = vector.broadcast %11 : vector<1x32xf32> to vector<16x32xf32>
    %42 = arith.mulf %34, %41 : vector<16x32xf32>
    %cst_8 = arith.constant dense<0.000000e+00> : vector<16xf32>
    %43 = vector.multi_reduction <add>, %42, %cst_8 [1] : vector<16x32xf32> to vector<16xf32>
    %44 = vector.shape_cast %43 : vector<16xf32> to vector<16x1xf32>
    %45 = vector.broadcast %17 : vector<1x1xf32> to vector<16x1xf32>
    %46 = arith.addf %44, %45 : vector<16x1xf32>
    %47 = tpu.iota {dimensions = array<i32: 1>} : vector<16x2xi32>
    %c0_i32 = arith.constant 0 : i32
    %48 = vector.broadcast %c0_i32 : i32 to vector<16x2xi32>
    %49 = arith.cmpi eq, %47, %48 : vector<16x2xi32>
    %50 = vector.shape_cast %40 : vector<16x1xf32> to vector<16x1xf32>
    %51 = vector.broadcast %50 : vector<16x1xf32> to vector<16x2xf32>
    %52 = vector.shape_cast %46 : vector<16x1xf32> to vector<16x1xf32>
    %53 = vector.broadcast %52 : vector<16x1xf32> to vector<16x2xf32>
    %54 = arith.select %49, %51, %53 : vector<16x2xi1>, vector<16x2xf32>
    %c0_9 = arith.constant 0 : index
    %c0_10 = arith.constant 0 : index
    %55 = vector.load %arg2[%c0_9, %c0_10] : memref<16x2xf32, #tpu.memory_space<vmem>>, vector<16x2xf32>
    tpu.vector_store %arg2[%c0_9, %c0_10], %54 {strides = array<i32>} : memref<16x2xf32, #tpu.memory_space<vmem>>, vector<16x2xf32>,
    return
  }
}

</mosaic_0001>

<bundles_post_ra>
// kernel: ode_func_with_context.1
= control target key start
LH: loop header
LB: loop body
LE: loop exit
PB: predicated region body
PF: predicated region fallthrough
CT: control target
= control target key end

     0   :  { %v244_v0 = vmov 1   ;;  %v245_v1 = vmov 0   ;;  %v28_v8 = vlaneseq  ;;  %vm62_vm0 = vcmask 261120   ;;  %s299_s0 = inlined_call_operand.vmem [shape: f32[16,2], index: 0, kind: input, shape index: {}]   ;;  %s300_s1 = inlined_call_operand.vmem [shape: f32[40,32], index: 1, kind: input, shape index: {}]   ;;  %s301_s2 = inlined_call_operand.vmem [shape: f32[16,2], index: 2, kind: output, shape index: {}]  }
   0x1   :  { %232 = vset.pattern.permute.xlu1 %v244_v0  ;;  %231 = vset.pattern.permute.xlu0 %v245_v1  ;;  %v16_v2 = vld [vmem:[%s299_s0] sm:$0xff]  ;;  %v17_v3 = vld [vmem:[%s299_s0 + $0x8] sm:$0xff]  ;;  %v14_v5 = vld [vmem:[%s300_s1 + $0x18] sm:$0xff]  ;;  %vm203_vm2 = vcmask 15360  }
   0x2   :  { %41 = vperm.xlu1 %232, %v16_v2   ;;  %20 = vperm.xlu0 %231, %v16_v2   ;;  %v15_v4 = vld [vmem:[%s300_s1 + $0x20] sm:$0xff]  ;;  %v13_v6 = vld [vmem:[%s300_s1 + $0x10] sm:$0xff]  ;;  %v12_v7 = vld [vmem:[%s300_s1 + $0x8] sm:$0xff]  ;;  %v29_v9 = vshrl.u32 %v28_v8, 7  ;;  %v179_v61 = vand.u32 127, %v28_v8 }
   0x3   :  { %218 = vmatprep.subr.mxu0 %v15_v4  ;;  %v11_v12 = vld [vmem:[%s300_s1] sm:$0xff] }
   0x4   :  { %219 = vmatpush3.msra.mxu0 %v15_v4  ;;  %v50_v10 = vsub.s32 1, %v29_v9  ;;  %v30_v11 = vsub.s32 0, %v29_v9  ;;  %v36_v13 = vsub.s32 2, %v29_v9  ;;  %v60_v31 = vsub.s32 3, %v29_v9 }
   0x5   :  { %220 = vmatprep.subr.mxu0 %v14_v5  ;;  %v148_v37 = vsub.s32 4, %v29_v9  ;;  %v166_v39 = vsub.s32 5, %v29_v9  ;;  %v160_v51 = vsub.s32 6, %v29_v9  ;;  %vm180_vm1 = vcmp.eq.s32.totalorder %v179_v61, 0 }
   0x6   :  { %45 = vperm.xlu1 %232, %v17_v3   ;;  %25 = vperm.xlu0 %231, %v17_v3   ;;  %v51_v14 = vrot.slane %v11_v12, %v50_v10  ;;  %v31_v15 = vrot.slane %v11_v12, %v30_v11  ;;  %v37_v16 = vrot.slane %v11_v12, %v36_v13 }
   0x7   :  { %221 = vmatpush3.msra.mxu0 %v14_v5  ;;  %v61_v32 = vrot.slane %v11_v12, %v60_v31  ;;  %v149_v38 = vrot.slane %v11_v12, %v148_v37  ;;  %v167_v45 = vrot.slane %v11_v12, %v166_v39  ;;  %v161_v52 = vrot.slane %v11_v12, %v160_v51 }
   0x8   :  { %222 = vmatprep.subr.mxu0 %v13_v6 }
   0x9   :  { %223 = vmatpush3.msra.mxu0 %v13_v6 }
   0xa   :  { %233 = vset.pattern.permute.xlu1 %v245_v1  ;;  %224 = vmatprep.subr.mxu0 %v12_v7 }
   0xb   :  { %225 = vmatpush3.msra.mxu0 %v12_v7 }
  0x7d   :  { %v42_v17 = vpop.permute.xlu1 %41  ;;  %v21_v18 = vpop.permute.xlu0 %20 }
  0x7e   :  { %v52_v19 = vmul.f32 %v51_v14, %v42_v17  ;;  %v32_v20 = vmul.f32 %v31_v15, %v21_v18 }
  0x80   :  { %v38_v21 = vadd.f32 %v37_v16, %v32_v20 }
  0x81   :  { %v46_v22 = vpop.permute.xlu1 %45  ;;  %v26_v23 = vpop.permute.xlu0 %25 }
  0x82   :  { %v54_v24 = vadd.f32 %v52_v19, %v38_v21  ;;  %v33_v25 = vmul.f32 %v31_v15, %v26_v23  ;;  %v53_v26 = vmul.f32 %v51_v14, %v46_v22 }
  0x84   :  { %236 = vtanh.f32 %v54_v24  ;;  %v39_v27 = vadd.f32 %v37_v16, %v33_v25 }
  0x86   :  { %v55_v28 = vadd.f32 %v53_v26, %v39_v27 }
  0x88   :  { %238 = vtanh.f32 %v55_v28 }
  0x91   :  { %v237_v29 = vpop.eup %236 }
  0x92   :  { %226 = vmatprep.mubr.msk.f32.mxu0 %vm62_vm0, %v237_v29 }
  0x95   :  { %v239_v30 = vpop.eup %238 }
  0x96   :  { %227 = vmatmul.mubr.msk.f32.vlgmr.msra.gmra.mxu0 %vm62_vm0, %v239_v30 }
 0x156   :  { %v228_v33 = vpop.f32.mrf.mxu0 }
 0x157   :  { %v141_v34 = vadd.f32 %v228_v33, %v61_v32 }
 0x158   :  { %v135_v35 = vpop.f32.mrf.mxu0 }
 0x159   :  { %240 = vtanh.f32 %v141_v34  ;;  %v136_v36 = vadd.f32 %v135_v35, %v61_v32 }
 0x15b   :  { %242 = vtanh.f32 %v136_v36 }
 0x166   :  { %v241_v40 = vpop.eup %240 }
 0x167   :  { %v151_v41 = vmul.f32 %v241_v40, %v149_v38  ;;  %v169_v49 = vmul.f32 %v241_v40, %v167_v45 }
 0x168   :  { %v243_v42 = vpop.eup %242 }
 0x169   :  { %v155_v43 = vsel %vm62_vm0, %v151_v41, 0.0  ;;  %v150_v44 = vmul.f32 %v243_v42, %v149_v38  ;;  %v168_v47 = vmul.f32 %v243_v42, %v167_v45  ;;  %v173_v50 = vsel %vm62_vm0, %v169_v49, 0.0 }
 0x16a   :  { %156 = vadd.xlane.f32.xlu1 %v155_v43 }
 0x16b   :  { %v152_v46 = vsel %vm62_vm0, %v150_v44, 0.0  ;;  %v170_v48 = vsel %vm62_vm0, %v168_v47, 0.0 }
 0x16c   :  { %153 = vadd.xlane.f32.xlu0 %v152_v46 }
 0x170   :  { %171 = vadd.xlane.f32.xlu0 %v170_v48 }
 0x174   :  { %174 = vadd.xlane.f32.xlu0 %v173_v50 }
 0x1f3   :  { %v157_v53 = vpop.xlane.xlu1 %156 }
 0x1f4   :  { %v163_v54 = vadd.f32 %v161_v52, %v157_v53 }
 0x1f5   :  { %v154_v55 = vpop.xlane.xlu0 %153 }
 0x1f6   :  { %v162_v56 = vadd.f32 %v161_v52, %v154_v55  ;;  %188 = vperm.xlu0 %231, %v163_v54  }
 0x1f8   :  { %183 = vperm.xlu1 %233, %v162_v56  }
 0x1f9   :  { %v172_v57 = vpop.xlane.xlu0 %171 }
 0x1fa   :  { %v176_v58 = vadd.f32 %v172_v57, %v161_v52  ;;  %235 = vset.pattern.permute.xlu0 %v244_v0 }
 0x1fc   :  { %234 = vset.pattern.permute.xlu1 %v244_v0 }
 0x1fd   :  { %193 = vperm.xlu1 %234, %v176_v58   ;;  %v175_v59 = vpop.xlane.xlu0 %174 }
 0x1fe   :  { %v177_v60 = vadd.f32 %v175_v59, %v161_v52 }
 0x201   :  { %198 = vperm.xlu1 %234, %v177_v60  }
 0x271   :  { %v189_v2 = vpop.permute.xlu0 %188 }
 0x273   :  { %v184_v62 = vpop.permute.xlu1 %183 }
 0x278   :  { %v194_v63 = vpop.permute.xlu1 %193 }
 0x279   :  { %v201_v1 = vsel %vm180_vm1, %v184_v62, %v194_v63 }
 0x27a   :  { %204 = vst.msk [vmem:[%s301_s2] sm:$0xff] %vm203_vm2, %v201_v1 }
 0x27c   :  { %v199_v3 = vpop.permute.xlu1 %198 }
 0x27d   :  { %v202_v4 = vsel %vm180_vm1, %v189_v2, %v199_v3 }
 0x27e   :  { %205 = vst.msk [vmem:[%s301_s2 + $0x8] sm:$0xff] %vm203_vm2, %v202_v4 }

</bundles_post_ra>
